<compile_context>
chip_gen: v7x
topology: tpu7x:2x2x1
jax: 0.10.0
libtpu: 0.0.40
codegen_flags: <defaults>
</compile_context>

<pallas_src>
import jax
import jax.numpy as jnp
from jax import lax
from jax.experimental import pallas as pl
from jax.experimental.pallas import tpu as pltpu

IN_DIM = 32
HIDDEN = 256
OUT_DIM = 16

_LANE = 128
_SUBLANE = 8


def _round_up(n, m):
    return ((n + m - 1) // m) * m


# ----------------------------------------------------------------------------------------
# Kernel
# ----------------------------------------------------------------------------------------
def featurenet_kernel(x_ref, w1_ref, b1_ref, w2_ref, b2_ref, w3_ref, b3_ref, o_ref):
    # x_ref: (tb, in_dim) f32; w*: bf16 (fan_in, fan_out); b*: f32 (1, fan_out);
    # o_ref: (tb, out_pad) f32 with out_pad a multiple of 128 (lane-dense stores).
    tb = x_ref.shape[0]
    rc = tb if tb <= _LANE else _LANE      # row chunk: keep (rc, 256) f32 intermediates small
    n_chunks = tb // rc                    # wrapper guarantees tb % rc == 0

    # Biases loaded once (small); weights are read from their refs inside each dot so only the
    # current layer's RHS is live (no ~52-vreg resident weight block next to the intermediates).
    b1 = b1_ref[...]
    b2 = b2_ref[...]
    b3 = b3_ref[...]

    def chunk(row0):
        rows = pl.ds(row0, rc)
        x = x_ref[rows, :].astype(jnp.bfloat16)          # in-kernel bf16 cast (VPU slack)
        h1 = jnp.dot(x, w1_ref[...], preferred_element_type=jnp.float32) + b1
        h1 = jnp.maximum(h1, 0.0).astype(jnp.bfloat16)
        h2 = jnp.dot(h1, w2_ref[...], preferred_element_type=jnp.float32) + b2
        h2 = jnp.maximum(h2, 0.0).astype(jnp.bfloat16)
        h3 = jnp.dot(h2, w3_ref[...], preferred_element_type=jnp.float32) + b3
        o_ref[rows, :] = h3.astype(o_ref.dtype)

    if n_chunks <= 2:
        # tiny, fully static
        for c in range(n_chunks):
            chunk(c * rc)
    else:
        # bounded unroll keeps vreg pressure / code size in check while giving the LLO
        # scheduler several independent chunks to overlap on the MXU pipes.
        unroll = 4 if n_chunks >= 4 else 2

        def body(c, carry):
            chunk(pl.multiple_of(c * rc, rc))
            return carry

        lax.fori_loop(0, n_chunks, body, 0, unroll=unroll)


# ----------------------------------------------------------------------------------------
# One-time parameter preparation (hoisted out of the per-call path)
# ----------------------------------------------------------------------------------------
def prepare_params(params):
    """bf16-cast weights and zero-pad the last layer's columns to a multiple of 128."""
    w3, b3 = params["w3"], params["b3"]
    out_dim = w3.shape[1]
    out_pad = _round_up(max(out_dim, _LANE), _LANE)
    if out_pad != out_dim:
        w3 = jnp.pad(w3, ((0, 0), (0, out_pad - out_dim)))
        b3 = jnp.pad(b3, ((0, 0), (0, out_pad - out_dim)))
    return {
        "w1": params["w1"].astype(jnp.bfloat16),
        "b1": params["b1"],
        "w2": params["w2"].astype(jnp.bfloat16),
        "b2": params["b2"],
        "w3": w3.astype(jnp.bfloat16),
        "b3": b3,
        "out_dim": out_dim,
        "out_pad": out_pad,
    }


def _select_batch_tile(B):
    if B <= _LANE:
        # small batch: single grid step, single chunk
        return _round_up(max(B, _SUBLANE), _SUBLANE)
    # >= 2 grid steps so the "parallel" axis shards across both v7x TensorCores;
    # up to 1024 rows per step (amortizes ~0.35us/step overhead), multiple of 128.
    half = -(-B // 2)
    return max(_LANE, min(1024, _round_up(half, _LANE)))


# ----------------------------------------------------------------------------------------
# Forward
# ----------------------------------------------------------------------------------------
def featurenet_forward(x, prepped, *, tb=None):
    """x: (B, in_dim) float32. prepped: output of prepare_params()."""
    B, in_dim = x.shape
    w1, b1 = prepped["w1"], prepped["b1"]
    w2, b2 = prepped["w2"], prepped["b2"]
    w3, b3 = prepped["w3"], prepped["b3"]
    hidden = w1.shape[1]
    out_dim = prepped["out_dim"]
    out_pad = prepped["out_pad"]

    if tb is None:
        tb = _select_batch_tile(B)
    B_pad = _round_up(B, tb)
    xp = x if B_pad == B else jnp.pad(x, ((0, B_pad - B), (0, 0)))

    grid = (B_pad // tb,)

    # --- VMEM budget / cost estimate derived from the chosen tile --------------------------
    tile_bytes = tb * in_dim * 4 + tb * out_pad * 4                        # x tile + out tile
    weight_bytes = (w1.size + w2.size + w3.size) * 2 + (b1.size + b2.size + b3.size) * 4
    vmem_limit = int(min(64 << 20, max(16 << 20,
                                       2 * tile_bytes + 2 * weight_bytes + (4 << 20))))
    flops = 2 * B_pad * (in_dim * hidden + hidden * hidden + hidden * out_pad)
    bytes_accessed = (xp.size * 4 + (w1.size + w2.size + w3.size) * 2
                      + (b1.size + b2.size + b3.size) * 4 + B_pad * out_pad * 4)

    out = pl.pallas_call(
        featurenet_kernel,
        out_shape=jax.ShapeDtypeStruct((B_pad, out_pad), jnp.float32),
        grid_spec=pltpu.PrefetchScalarGridSpec(
            num_scalar_prefetch=0,
            grid=grid,
            in_specs=[
                pl.BlockSpec((tb, in_dim), lambda i: (i, 0)),   # x tile (f32, cast in kernel)
                pl.BlockSpec(w1.shape, lambda i: (0, 0)),       # w1 (resident bf16)
                pl.BlockSpec(b1.shape, lambda i: (0, 0)),       # b1 (1, H) f32
                pl.BlockSpec(w2.shape, lambda i: (0, 0)),       # w2
                pl.BlockSpec(b2.shape, lambda i: (0, 0)),       # b2
                pl.BlockSpec(w3.shape, lambda i: (0, 0)),       # w3 (padded cols)
                pl.BlockSpec(b3.shape, lambda i: (0, 0)),       # b3 (padded cols)
            ],
            out_specs=pl.BlockSpec((tb, out_pad), lambda i: (i, 0)),
        ),
        compiler_params=pltpu.CompilerParams(
            dimension_semantics=("parallel",),
            vmem_limit_bytes=vmem_limit,
        ),
        cost_estimate=pl.CostEstimate(
            flops=int(flops), transcendentals=0, bytes_accessed=int(bytes_accessed)),
    )(xp, w1, b1, w2, b2, w3, b3)

    # TODO(synk): for v5e-heavy deployments, repack the (rc,16) results into a lane-dense
    # (rc/8,128) slab instead of 128 padded f32 columns to cut output HBM writeback ~8x.
    return out[:B, :out_dim]


def featurenet_apply(x, params):
    """Convenience wrapper: raw (un-prepared) params -> forward."""
    return featurenet_forward(x, prepare_params(params))


# ----------------------------------------------------------------------------------------
# Init + references
# ----------------------------------------------------------------------------------------
def init_params(key, in_dim, out_dim, hidden=HIDDEN):
    """PyTorch nn.Linear-style init (uniform +/- 1/sqrt(fan_in)); weights (fan_in, fan_out)."""
    ks = jax.random.split(key, 6)

    def linear(kw, kb, fan_in, fan_out):
        bound = 1.0 / jnp.sqrt(fan_in)
        w = jax.random.uniform(kw, (fan_in, fan_out), jnp.float32, -bound, bound)
        b = jax.random.uniform(kb, (1, fan_out), jnp.float32, -bound, bound)
        return w, b

    w1, b1 = linear(ks[0], ks[1], in_dim, hidden)
    w2, b2 = linear(ks[2], ks[3], hidden, hidden)
    w3, b3 = linear(ks[4], ks[5], hidden, out_dim)
    return {"w1": w1, "b1": b1, "w2": w2, "b2": b2, "w3": w3, "b3": b3}


def featurenet_ref_matched(x, p):
    """Pure-JAX reference in the same precision regime as the kernel (bf16 operands, f32 acc)."""
    bf = jnp.bfloat16
    h = jnp.dot(x.astype(bf), p["w1"].astype(bf), preferred_element_type=jnp.float32) + p["b1"]
    h = jnp.maximum(h, 0.0).astype(bf)
    h = jnp.dot(h, p["w2"].astype(bf), preferred_element_type=jnp.float32) + p["b2"]
    h = jnp.maximum(h, 0.0).astype(bf)
    return jnp.dot(h, p["w3"].astype(bf), preferred_element_type=jnp.float32) + p["b3"]


def featurenet_ref_f32(x, p):
    h = jnp.maximum(x @ p["w1"] + p["b1"], 0.0)
    h = jnp.maximum(h @ p["w2"] + p["b2"], 0.0)
    return h @ p["w3"] + p["b3"]


if __name__ == "__main__":
    key = jax.random.PRNGKey(0)
    kx, kx2, kp = jax.random.split(key, 3)

    params = init_params(kp, IN_DIM, OUT_DIM)
    prepped = prepare_params(params)

    # --- primary small-batch run (single grid step, single chunk) -------------------------
    B = 16
    x = jax.random.normal(kx, (B, IN_DIM), dtype=jnp.float32)
    out = featurenet_forward(x, prepped)
    out = jax.block_until_ready(out)
    assert out.shape == (B, OUT_DIM)

    ref_m = featurenet_ref_matched(x, params)
    assert jnp.allclose(out, ref_m, atol=1e-3, rtol=1e-3), "mismatch vs matched-precision ref"
    ref_f = featurenet_ref_f32(x, params)
    assert jnp.allclose(out, ref_f, atol=1e-1, rtol=1e-1), "mismatch vs f32 reference"

    # --- larger batch: exercises >=2 parallel grid steps + multi-chunk fori path ----------
    B2 = 768
    x2 = jax.random.normal(kx2, (B2, IN_DIM), dtype=jnp.float32)
    out2 = jax.block_until_ready(featurenet_forward(x2, prepped))
    assert out2.shape == (B2, OUT_DIM)
    ref2 = featurenet_ref_matched(x2, params)
    assert jnp.allclose(out2, ref2, atol=1e-3, rtol=1e-3), "mismatch (large batch) vs matched ref"

    print("KERNEL_OK")
</pallas_src>

<mosaic_0001>
module attributes {stable_mosaic.version = 11 : i64} {
  func.func @featurenet_kernel(%arg0: i32, %arg1: memref<16x32xf32, #tpu.memory_space<vmem>>, %arg2: memref<32x256xbf16, #tpu.memory_space<vmem>>, %arg3: memref<1x256xf32, #tpu.memory_space<vmem>>, %arg4: memref<256x256xbf16, #tpu.memory_space<vmem>>, %arg5: memref<1x256xf32, #tpu.memory_space<vmem>>, %arg6: memref<256x128xbf16, #tpu.memory_space<vmem>>, %arg7: memref<1x128xf32, #tpu.memory_space<vmem>>, %arg8: memref<16x128xf32, #tpu.memory_space<vmem>>) attributes {dimension_semantics = [#tpu.dimension_semantics<parallel>], iteration_bounds = array<i64: 1>, scalar_prefetch = 0 : i64, scratch_operands = 0 : i64, tpu.core_type = #tpu.core_type<tc>, window_params = [{transform_indices = @transform_0, window_bounds = array<i64: 16, 32>}, {pipeline_mode = #tpu.pipeline_mode<synchronous>, transform_indices = @transform_1, window_bounds = array<i64: 32, 256>}, {pipeline_mode = #tpu.pipeline_mode<synchronous>, transform_indices = @transform_2, window_bounds = array<i64: 1, 256>}, {pipeline_mode = #tpu.pipeline_mode<synchronous>, transform_indices = @transform_3, window_bounds = array<i64: 256, 256>}, {pipeline_mode = #tpu.pipeline_mode<synchronous>, transform_indices = @transform_4, window_bounds = array<i64: 1, 256>}, {pipeline_mode = #tpu.pipeline_mode<synchronous>, transform_indices = @transform_5, window_bounds = array<i64: 256, 128>}, {pipeline_mode = #tpu.pipeline_mode<synchronous>, transform_indices = @transform_6, window_bounds = array<i64: 1, 128>}, {transform_indices = @transform_7, window_bounds = array<i64: 16, 128>}]} {
    %c0 = arith.constant 0 : index
    %c0_0 = arith.constant 0 : index
    %0 = vector.load %arg3[%c0, %c0_0] : memref<1x256xf32, #tpu.memory_space<vmem>>, vector<1x256xf32>
    %c0_1 = arith.constant 0 : index
    %c0_2 = arith.constant 0 : index
    %1 = vector.load %arg5[%c0_1, %c0_2] : memref<1x256xf32, #tpu.memory_space<vmem>>, vector<1x256xf32>
    %c0_3 = arith.constant 0 : index
    %c0_4 = arith.constant 0 : index
    %2 = vector.load %arg7[%c0_3, %c0_4] : memref<1x128xf32, #tpu.memory_space<vmem>>, vector<1x128xf32>
    %c0_5 = arith.constant 0 : index
    %c0_6 = arith.constant 0 : index
    %3 = vector.load %arg1[%c0_5, %c0_6] : memref<16x32xf32, #tpu.memory_space<vmem>>, vector<16x32xf32>
    %4 = arith.truncf %3 : vector<16x32xf32> to vector<16x32xbf16>
    %c0_7 = arith.constant 0 : index
    %c0_8 = arith.constant 0 : index
    %5 = vector.load %arg2[%c0_7, %c0_8] : memref<32x256xbf16, #tpu.memory_space<vmem>>, vector<32x256xbf16>
    %cst = arith.constant dense<0.000000e+00> : vector<16x256xf32>
    %6 = tpu.matmul %4, %5, %cst {dimension_numbers = #tpu.dot_dimension_numbers<[1], [0], [0], [1], [0, 0, 1, 1], [], []>} : vector<16x32xbf16>, vector<32x256xbf16>, vector<16x256xf32> -> vector<16x256xf32>
    %7 = vector.broadcast %0 : vector<1x256xf32> to vector<16x256xf32>
    %8 = arith.addf %6, %7 : vector<16x256xf32>
    %cst_9 = arith.constant 0.000000e+00 : f32
    %9 = vector.broadcast %cst_9 : f32 to vector<16x256xf32>
    %10 = arith.maximumf %8, %9 : vector<16x256xf32>
    %11 = arith.truncf %10 : vector<16x256xf32> to vector<16x256xbf16>
    %c0_10 = arith.constant 0 : index
    %c0_11 = arith.constant 0 : index
    %12 = vector.load %arg4[%c0_10, %c0_11] : memref<256x256xbf16, #tpu.memory_space<vmem>>, vector<256x256xbf16>
    %cst_12 = arith.constant dense<0.000000e+00> : vector<16x256xf32>
    %13 = tpu.matmul %11, %12, %cst_12 {dimension_numbers = #tpu.dot_dimension_numbers<[1], [0], [0], [1], [0, 0, 1, 1], [], []>} : vector<16x256xbf16>, vector<256x256xbf16>, vector<16x256xf32> -> vector<16x256xf32>
    %14 = vector.broadcast %1 : vector<1x256xf32> to vector<16x256xf32>
    %15 = arith.addf %13, %14 : vector<16x256xf32>
    %cst_13 = arith.constant 0.000000e+00 : f32
    %16 = vector.broadcast %cst_13 : f32 to vector<16x256xf32>
    %17 = arith.maximumf %15, %16 : vector<16x256xf32>
    %18 = arith.truncf %17 : vector<16x256xf32> to vector<16x256xbf16>
    %c0_14 = arith.constant 0 : index
    %c0_15 = arith.constant 0 : index
    %19 = vector.load %arg6[%c0_14, %c0_15] : memref<256x128xbf16, #tpu.memory_space<vmem>>, vector<256x128xbf16>
    %cst_16 = arith.constant dense<0.000000e+00> : vector<16x128xf32>
    %20 = tpu.matmul %18, %19, %cst_16 {dimension_numbers = #tpu.dot_dimension_numbers<[1], [0], [0], [1], [0, 0, 1, 1], [], []>} : vector<16x256xbf16>, vector<256x128xbf16>, vector<16x128xf32> -> vector<16x128xf32>
    %21 = vector.broadcast %2 : vector<1x128xf32> to vector<16x128xf32>
    %22 = arith.addf %20, %21 : vector<16x128xf32>
    %c0_17 = arith.constant 0 : index
    %c0_18 = arith.constant 0 : index
    %23 = vector.load %arg8[%c0_17, %c0_18] : memref<16x128xf32, #tpu.memory_space<vmem>>, vector<16x128xf32>
    tpu.vector_store %arg8[%c0_17, %c0_18], %22 {strides = array<i32>} : memref<16x128xf32, #tpu.memory_space<vmem>>, vector<16x128xf32>,
    return
  }
  func.func @transform_0(%arg0: i32) -> (i32, i32) {
    %c0_i32 = arith.constant 0 : i32
    %c0_i32_0 = arith.constant 0 : i32
    return %arg0, %c0_i32 : i32, i32
  }
  func.func @transform_1(%arg0: i32) -> (i32, i32) {
    %c0_i32 = arith.constant 0 : i32
    %c0_i32_0 = arith.constant 0 : i32
    %c0_i32_1 = arith.constant 0 : i32
    return %c0_i32, %c0_i32_0 : i32, i32
  }
  func.func @transform_2(%arg0: i32) -> (i32, i32) {
    %c0_i32 = arith.constant 0 : i32
    %c0_i32_0 = arith.constant 0 : i32
    %c0_i32_1 = arith.constant 0 : i32
    return %c0_i32, %c0_i32_0 : i32, i32
  }
  func.func @transform_3(%arg0: i32) -> (i32, i32) {
    %c0_i32 = arith.constant 0 : i32
    %c0_i32_0 = arith.constant 0 : i32
    %c0_i32_1 = arith.constant 0 : i32
    return %c0_i32, %c0_i32_0 : i32, i32
  }
  func.func @transform_4(%arg0: i32) -> (i32, i32) {
    %c0_i32 = arith.constant 0 : i32
    %c0_i32_0 = arith.constant 0 : i32
    %c0_i32_1 = arith.constant 0 : i32
    return %c0_i32, %c0_i32_0 : i32, i32
  }
  func.func @transform_5(%arg0: i32) -> (i32, i32) {
    %c0_i32 = arith.constant 0 : i32
    %c0_i32_0 = arith.constant 0 : i32
    %c0_i32_1 = arith.constant 0 : i32
    return %c0_i32, %c0_i32_0 : i32, i32
  }
  func.func @transform_6(%arg0: i32) -> (i32, i32) {
    %c0_i32 = arith.constant 0 : i32
    %c0_i32_0 = arith.constant 0 : i32
    %c0_i32_1 = arith.constant 0 : i32
    return %c0_i32, %c0_i32_0 : i32, i32
  }
  func.func @transform_7(%arg0: i32) -> (i32, i32) {
    %c0_i32 = arith.constant 0 : i32
    %c0_i32_0 = arith.constant 0 : i32
    return %arg0, %c0_i32 : i32, i32
  }
}

</mosaic_0001>

<bundles_post_ra>
// kernel: tpu_custom_call.1
= control target key start
LH: loop header
LB: loop body
LE: loop exit
PB: predicated region body
PF: predicated region fallthrough
CT: control target
= control target key end

     0   :  { %12 = vsyncpa [#allocation3], 0  ;;  %s1044_s0 = inlined_call_operand.hbm [shape: f32[16,32], index: 0, kind: input, shape index: {}]   ;;  %s1045_s1 = inlined_call_operand.hbm [shape: bf16[32,256], index: 1, kind: input, shape index: {}]   ;;  %s1046_s2 = inlined_call_operand.vmem [shape: f32[1,256], index: 2, kind: input, shape index: {}]   ;;  %s1047_s3 = inlined_call_operand.hbm [shape: bf16[256,256], index: 3, kind: input, shape index: {}]   ;;  %s1048_s4 = inlined_call_operand.vmem [shape: f32[1,256], index: 4, kind: input, shape index: {}]   ;;  %s1049_s5 = inlined_call_operand.hbm [shape: bf16[256,128], index: 5, kind: input, shape index: {}]   ;;  %s1050_s6 = inlined_call_operand.vmem [shape: f32[1,128], index: 6, kind: input, shape index: {}]   ;;  %s1051_s7 = inlined_call_operand.hbm [shape: f32[16,128], index: 7, kind: output, shape index: {}]  }
   0x1   :  { %13 = vsyncpa [#allocation6], 0 }
   0x2   :  { %14 = vsyncpa [#allocation9], 0 }
   0x3   :  { %15 = vsyncpa [#allocation4], 0  ;;  %s899_s24 = smov [#allocation5]   ;;  %s900_s26 = smov [#allocation2]  }
   0x4   :  { %s33_s25 = sshll.u32 %s899_s24, 4  ;;  %s21_s27 = sshll.u32 %s900_s26, 4  ;;  %s34_s25 = int_to_ptr.vmem [resolvable:$true] %s33_s25  ;;  %s949_s27 = int_to_ptr.vmem [resolvable:$true] %s21_s27 }
   0x5   :  { %s781_s30 = scalar_lea.hbm %s1045_s1, 512 }
   0x6   :  { %p782_p0 = scmp.ne.s32.totalorder %s1045_s1, %s781_s30  ;;  %p785_p1 = scmp.lt.u32.totalorder %s781_s30, %s1045_s1 }
   0x8   :  { %p787_p2 = pnand %p785_p1, %p782_p0 }
   0xa   :  { %790 = shalt.err (!%p787_p2)
}
   0xb   :  { %s791_s12 = scalar_lea.vmem %s34_s25, 512  ;;  %p796_p4 = scmp.lt.s32.totalorder %s34_s25, %s34_s25 }
   0xc   :  { %p792_p3 = scmp.ne.s32.totalorder %s34_s25, %s791_s12  ;;  %p797_p5 = scmp.lt.s32.totalorder %s791_s12, %s791_s12 }
   0xe   :  { %p798_p6 = por %p797_p5, %p796_p4 }
  0x10   :  { %p799_p7 = pnand %p798_p6, %p792_p3 }
  0x12   :  { %802 = shalt.err (!%p799_p7)
}
  0x13   :  { %s901_s13 = smov 128   ;;  %s902_s14 = smov 8  }
  0x14   :  { %39 = dma.hbm_to_vmem [thread:$0]  %s1045_s1, 512, %s34_s25, [#allocation6], %s901_s13, %s901_s13, %s902_s14  }
  0x15   :  { %s803_s19 = scalar_lea.hbm %s1044_s0, 256 }
  0x16   :  { %p804_p8 = scmp.ne.s32.totalorder %s1044_s0, %s803_s19  ;;  %p807_p9 = scmp.lt.u32.totalorder %s803_s19, %s1044_s0 }
  0x18   :  { %p809_p10 = pnand %p807_p9, %p804_p8 }
  0x1a   :  { %812 = shalt.err (!%p809_p10)
}
  0x1b   :  { %s813_s24 = scalar_lea.vmem %s949_s27, 256  ;;  %p818_p12 = scmp.lt.s32.totalorder %s949_s27, %s949_s27 }
  0x1c   :  { %p814_p11 = scmp.ne.s32.totalorder %s949_s27, %s813_s24  ;;  %p819_p13 = scmp.lt.s32.totalorder %s813_s24, %s813_s24 }
  0x1e   :  { %p820_p0 = por %p819_p13, %p818_p12 }
  0x20   :  { %p821_p1 = pnand %p820_p0, %p814_p11 }
  0x22   :  { %824 = shalt.err (!%p821_p1)
}
  0x23   :  { %27 = dma.hbm_to_vmem [thread:$0]  %s1044_s0, 256, %s949_s27, [#allocation3], %s901_s13, %s901_s13, %s902_s14  }
  0x24   :  { %s903_s26 = smov [#allocation7]   ;;  %s904_s29 = smov [#allocation8]  }
  0x25   :  { %s47_s28 = sshll.u32 %s903_s26, 4  ;;  %s61_s30 = sshll.u32 %s904_s29, 4  ;;  %s48_s28 = int_to_ptr.vmem [resolvable:$true] %s47_s28  ;;  %s986_s30 = int_to_ptr.vmem [resolvable:$true] %s61_s30 }
  0x26   :  { %s825_s10 = scalar_lea.hbm %s1047_s3, 4096 }
  0x27   :  { %p826_p2 = scmp.ne.s32.totalorder %s1047_s3, %s825_s10  ;;  %p829_p3 = scmp.lt.u32.totalorder %s825_s10, %s1047_s3 }
  0x29   :  { %p831_p4 = pnand %p829_p3, %p826_p2 }
  0x2b   :  { %834 = shalt.err (!%p831_p4)
}
  0x2c   :  { %s835_s0 = scalar_lea.vmem %s48_s28, 4096  ;;  %p840_p6 = scmp.lt.s32.totalorder %s48_s28, %s48_s28 }
  0x2d   :  { %p836_p5 = scmp.ne.s32.totalorder %s48_s28, %s835_s0  ;;  %p841_p7 = scmp.lt.s32.totalorder %s835_s0, %s835_s0 }
  0x2f   :  { %p842_p8 = por %p841_p7, %p840_p6 }
  0x31   :  { %p843_p9 = pnand %p842_p8, %p836_p5 }
  0x33   :  { %846 = shalt.err (!%p843_p9)
}
  0x34   :  { %53 = dma.hbm_to_vmem [thread:$0]  %s1047_s3, 4096, %s48_s28, [#allocation6], %s901_s13, %s901_s13, %s902_s14  }
  0x35   :  { %s847_s20 = scalar_lea.hbm %s1049_s5, 2048 }
  0x36   :  { %p848_p10 = scmp.ne.s32.totalorder %s1049_s5, %s847_s20  ;;  %p851_p11 = scmp.lt.u32.totalorder %s847_s20, %s1049_s5 }
  0x38   :  { %p853_p12 = pnand %p851_p11, %p848_p10 }
  0x3a   :  { %856 = shalt.err (!%p853_p12)
}
  0x3b   :  { %s857_s1 = scalar_lea.vmem %s986_s30, 2048  ;;  %p862_p0 = scmp.lt.s32.totalorder %s986_s30, %s986_s30 }
  0x3c   :  { %p858_p13 = scmp.ne.s32.totalorder %s986_s30, %s857_s1  ;;  %p863_p1 = scmp.lt.s32.totalorder %s857_s1, %s857_s1 }
  0x3e   :  { %p864_p2 = por %p863_p1, %p862_p0 }
  0x40   :  { %p865_p3 = pnand %p864_p2, %p858_p13 }
  0x42   :  { %868 = shalt.err (!%p865_p3)
}
  0x43   :  { %s905_s3 = smov 64   ;;  %s906_s25 = smov 4  }
  0x44   :  { %67 = dma.hbm_to_vmem [thread:$0]  %s1049_s5, 2048, %s986_s30, [#allocation9], %s905_s3, %s905_s3, %s906_s25  }
  0x45   :  { %891 = dma.done.wait [#allocation3], 256  }
  0x46   :  { %892 = vsyncadd [#allocation3], 4294967040 }
  0x47   :  { %893 = dma.done.wait [#allocation6], 4608  }
  0x48   :  { %894 = vsyncadd [#allocation6], 4294962688 }
  0x49   :  { %895 = dma.done.wait [#allocation9], 2048  }
  0x4a   :  { %896 = vsyncadd [#allocation9], 4294965248  ;;  %v907_v0 = vmov 0   ;;  %v711_v1 = vld [vmem:[#allocation5 + $0x4] ss:$8 sps:$4 sm:$0xff]   ;;  %v86_v5 = vld [vmem:[#allocation2] sm:$0xff]  ;;  %v94_v51 = vlaneseq }
  0x4b   :  { %160 = vmatprep.mubr.bf16.mxu0 %v907_v0  ;;  %v713_v2 = vld [vmem:[#allocation5] ss:$8 sps:$4 sm:$0xff]   ;;  %128 = vmatprep.subr.bf16.mxu0 %v711_v1  ;;  %v714_v3 = vld [vmem:[#allocation5 + $0x14] ss:$8 sps:$4 sm:$0xff]   ;;  %v716_v4 = vld [vmem:[#allocation5 + $0x10] ss:$8 sps:$4 sm:$0xff]  }
  0x4c   :  { %129 = vmatpush1.bf16.msra.mxu0 %v713_v2  ;;  %v87_v6 = vld [vmem:[#allocation2 + $0x8] sm:$0xff]  ;;  %v717_v7 = vld [vmem:[#allocation7 + $0x4] ss:$8 sps:$4 sm:$0xff]   ;;  %v719_v8 = vld [vmem:[#allocation7] ss:$8 sps:$4 sm:$0xff]   ;;  %vm124_vm0 = vcmask 261120  }
  0x4d   :  { %130 = vmatprep.subr.bf16.mxu0 %v714_v3  ;;  %v720_v9 = vld [vmem:[#allocation7 + $0x14] ss:$8 sps:$4 sm:$0xff]   ;;  %v88_v10 = vpack.c.bf16 %v87_v6, %v86_v5  ;;  %380 = vmatprep.subr.bf16.mxu1 %v717_v7  ;;  %v722_v11 = vld [vmem:[#allocation7 + $0x10] ss:$8 sps:$4 sm:$0xff]   ;;  %v723_v12 = vld [vmem:[#allocation7 + $0x24] ss:$8 sps:$4 sm:$0xff]  }
  0x4e   :  { %381 = vmatpush1.bf16.msra.mxu1 %v719_v8  ;;  %v725_v13 = vld [vmem:[#allocation7 + $0x20] ss:$8 sps:$4 sm:$0xff]   ;;  %v726_v14 = vld [vmem:[#allocation7 + $0x34] ss:$8 sps:$4 sm:$0xff]   ;;  %v728_v15 = vld [vmem:[#allocation7 + $0x30] ss:$8 sps:$4 sm:$0xff]  }
  0x4f   :  { %382 = vmatprep.subr.bf16.mxu1 %v720_v9  ;;  %v729_v16 = vld [vmem:[#allocation7 + $0x44] ss:$8 sps:$4 sm:$0xff]   ;;  %v731_v17 = vld [vmem:[#allocation7 + $0x40] ss:$8 sps:$4 sm:$0xff]   ;;  %v732_v18 = vld [vmem:[#allocation7 + $0x54] ss:$8 sps:$4 sm:$0xff]  }
  0x50   :  { %131 = vmatpush1.bf16.msra.mxu0 %v716_v4  ;;  %v734_v19 = vld [vmem:[#allocation7 + $0x50] ss:$8 sps:$4 sm:$0xff]   ;;  %v735_v20 = vld [vmem:[#allocation7 + $0x64] ss:$8 sps:$4 sm:$0xff]   ;;  %v737_v21 = vld [vmem:[#allocation7 + $0x60] ss:$8 sps:$4 sm:$0xff]  }
  0x51   :  { %v738_v22 = vld [vmem:[#allocation7 + $0x74] ss:$8 sps:$4 sm:$0xff]   ;;  %v740_v23 = vld [vmem:[#allocation7 + $0x70] ss:$8 sps:$4 sm:$0xff]   ;;  %v741_v24 = vld [vmem:[#allocation7 + $0x84] ss:$8 sps:$4 sm:$0xff]  }
  0x52   :  { %383 = vmatpush1.bf16.msra.mxu1 %v722_v11  ;;  %v743_v25 = vld [vmem:[#allocation7 + $0x80] ss:$8 sps:$4 sm:$0xff]   ;;  %v744_v26 = vld [vmem:[#allocation7 + $0x94] ss:$8 sps:$4 sm:$0xff]   ;;  %v746_v27 = vld [vmem:[#allocation7 + $0x90] ss:$8 sps:$4 sm:$0xff]  }
  0x53   :  { %629 = vmatmul.mubr.msk.bf16.vlgmr.msra.gmra.mrb[0].mxu0 %vm124_vm0, %v88_v10  ;;  %384 = vmatprep.subr.bf16.mxu1 %v723_v12  ;;  %v747_v28 = vld [vmem:[#allocation7 + $0xa4] ss:$8 sps:$4 sm:$0xff]   ;;  %v749_v29 = vld [vmem:[#allocation7 + $0xa0] ss:$8 sps:$4 sm:$0xff]   ;;  %v750_v30 = vld [vmem:[#allocation7 + $0xb4] ss:$8 sps:$4 sm:$0xff]  }
  0x54   :  { %v752_v31 = vld [vmem:[#allocation7 + $0xb0] ss:$8 sps:$4 sm:$0xff]   ;;  %v753_v32 = vld [vmem:[#allocation7 + $0xc4] ss:$8 sps:$4 sm:$0xff]   ;;  %v755_v33 = vld [vmem:[#allocation7 + $0xc0] ss:$8 sps:$4 sm:$0xff]  }
  0x55   :  { %v756_v34 = vld [vmem:[#allocation7 + $0xd4] ss:$8 sps:$4 sm:$0xff]   ;;  %v758_v35 = vld [vmem:[#allocation7 + $0xd0] ss:$8 sps:$4 sm:$0xff]   ;;  %v759_v36 = vld [vmem:[#allocation7 + $0xe4] ss:$8 sps:$4 sm:$0xff]  }
  0x56   :  { %385 = vmatpush1.bf16.msra.mxu1 %v725_v13  ;;  %v761_v37 = vld [vmem:[#allocation7 + $0xe0] ss:$8 sps:$4 sm:$0xff]   ;;  %v762_v38 = vld [vmem:[#allocation7 + $0xf4] ss:$8 sps:$4 sm:$0xff]   ;;  %v764_v39 = vld [vmem:[#allocation7 + $0xf0] ss:$8 sps:$4 sm:$0xff]  }
  0x57   :  { %386 = vmatprep.subr.bf16.mxu1 %v726_v14  ;;  %v765_v40 = vld [vmem:[#allocation8 + $0x40] sm:$0xff]   ;;  %v767_v42 = vld [vmem:[#allocation8 + $0x48] sm:$0xff]   ;;  %v769_v44 = vld [vmem:[#allocation8 + $0x50] sm:$0xff]   ;;  %v95_v52 = vshrl.u32 %v94_v51, 7  ;;  %s908_s9 = smov [#allocation10]  }
  0x58   :  { %v766_v41 = vld [vmem:[#allocation8] sm:$0xff]   ;;  %679 = vmatprep.subr.bf16.mxu0 %v765_v40  ;;  %v768_v43 = vld [vmem:[#allocation8 + $0x8] sm:$0xff]   ;;  %v770_v45 = vld [vmem:[#allocation8 + $0x10] sm:$0xff]   ;;  %s611_s10 = sshll.u32 %s908_s9, 4  ;;  %s612_s10 = int_to_ptr.vmem [resolvable:$true] %s611_s10 }
  0x59   :  { %680 = vmatpush3.bf16.msra.mxu0 %v766_v41  ;;  %v771_v46 = vld [vmem:[#allocation8 + $0x58] sm:$0xff]   ;;  %v773_v48 = vld [vmem:[#allocation8 + $0x60] sm:$0xff]   ;;  %v775_v50 = vld [vmem:[#allocation8 + $0x68] sm:$0xff]   ;;  %v96_v53 = vsub.s32 0, %v95_v52  ;;  %v100_v55 = vsub.s32 1, %v95_v52  ;;  %s869_s11 = scalar_lea.vmem %s612_s10, 256  ;;  %p874_p5 = scmp.lt.s32.totalorder %s612_s10, %s612_s10 }
  0x5a   :  { %387 = vmatpush1.bf16.msra.mxu1 %v728_v15  ;;  %681 = vmatprep.subr.bf16.mxu0 %v767_v42  ;;  %v772_v47 = vld [vmem:[#allocation8 + $0x18] sm:$0xff]   ;;  %v774_v49 = vld [vmem:[#allocation8 + $0x20] sm:$0xff]   ;;  %v83_v54 = vld [vmem:[%s1046_s2] sm:$0x3]  ;;  %p870_p4 = scmp.ne.s32.totalorder %s612_s10, %s869_s11  ;;  %p875_p6 = scmp.lt.s32.totalorder %s869_s11, %s869_s11 }
  0x5b   :  { %388 = vmatprep.subr.bf16.mxu1 %v729_v16  ;;  %v97_v56 = vrot.slane %v83_v54, %v96_v53  ;;  %v101_v57 = vrot.slane %v83_v54, %v100_v55  ;;  %v776_v8 = vld [vmem:[#allocation8 + $0x28] sm:$0xff]   ;;  %v777_v9 = vld [vmem:[#allocation8 + $0x70] sm:$0xff]   ;;  %v779_v11 = vld [vmem:[#allocation8 + $0x78] sm:$0xff]  }
  0x5c   :  { %v778_v10 = vld [vmem:[#allocation8 + $0x30] sm:$0xff]   ;;  %v780_v12 = vld [vmem:[#allocation8 + $0x38] sm:$0xff]   ;;  %p876_p7 = por %p875_p6, %p874_p5 }
  0x5d   :  { %682 = vmatpush3.bf16.msra.mxu0 %v768_v43  ;;  %v84_v13 = vld [vmem:[%s1048_s4] sm:$0x3] }
  0x5e   :  { %389 = vmatpush1.bf16.msra.mxu1 %v731_v17  ;;  %683 = vmatprep.subr.bf16.mxu0 %v769_v44  ;;  %v213_v14 = vrot.slane %v84_v13, %v96_v53  ;;  %v217_v15 = vrot.slane %v84_v13, %v100_v55  ;;  %p877_p8 = pnand %p876_p7, %p870_p4 }
  0x5f   :  { %390 = vmatprep.subr.bf16.mxu1 %v732_v18 }
  0x61   :  { %684 = vmatpush3.bf16.msra.mxu0 %v770_v45 }
  0x62   :  { %391 = vmatpush1.bf16.msra.mxu1 %v734_v19  ;;  %685 = vmatprep.subr.bf16.mxu0 %v771_v46 }
  0x63   :  { %392 = vmatprep.subr.bf16.mxu1 %v735_v20 }
  0x65   :  { %686 = vmatpush3.bf16.msra.mxu0 %v772_v47 }
  0x66   :  { %393 = vmatpush1.bf16.msra.mxu1 %v737_v21  ;;  %687 = vmatprep.subr.bf16.mxu0 %v773_v48 }
  0x67   :  { %394 = vmatprep.subr.bf16.mxu1 %v738_v22 }
  0x69   :  { %688 = vmatpush3.bf16.msra.mxu0 %v774_v49 }
  0x6a   :  { %395 = vmatpush1.bf16.msra.mxu1 %v740_v23  ;;  %689 = vmatprep.subr.bf16.mxu0 %v775_v50 }
  0x6b   :  { %396 = vmatprep.subr.bf16.mxu1 %v741_v24 }
  0x6d   :  { %690 = vmatpush3.bf16.msra.mxu0 %v776_v8 }
  0x6e   :  { %397 = vmatpush1.bf16.msra.mxu1 %v743_v25  ;;  %691 = vmatprep.subr.bf16.mxu0 %v777_v9 }
  0x6f   :  { %398 = vmatprep.subr.bf16.mxu1 %v744_v26 }
  0x71   :  { %692 = vmatpush3.bf16.msra.mxu0 %v778_v10 }
  0x72   :  { %399 = vmatpush1.bf16.msra.mxu1 %v746_v27  ;;  %693 = vmatprep.subr.bf16.mxu0 %v779_v11 }
  0x73   :  { %400 = vmatprep.subr.bf16.mxu1 %v747_v28 }
  0x75   :  { %694 = vmatpush3.bf16.msra.mxu0 %v780_v12 }
  0x76   :  { %401 = vmatpush1.bf16.msra.mxu1 %v749_v29 }
  0x77   :  { %402 = vmatprep.subr.bf16.mxu1 %v750_v30 }
  0x7a   :  { %403 = vmatpush1.bf16.msra.mxu1 %v752_v31  ;;  %v662_v31 = vld [vmem:[%s1050_s6] ss:$0 sm:$0xff] }
  0x7b   :  { %404 = vmatprep.subr.bf16.mxu1 %v753_v32 }
  0x7e   :  { %405 = vmatpush1.bf16.msra.mxu1 %v755_v33 }
  0x7f   :  { %406 = vmatprep.subr.bf16.mxu1 %v756_v34 }
  0x82   :  { %407 = vmatpush1.bf16.msra.mxu1 %v758_v35 }
  0x83   :  { %408 = vmatprep.subr.bf16.mxu1 %v759_v36 }
  0x86   :  { %409 = vmatpush1.bf16.msra.mxu1 %v761_v37 }
  0x87   :  { %410 = vmatprep.subr.bf16.mxu1 %v762_v38 }
  0x8a   :  { %411 = vmatpush1.bf16.msra.mxu1 %v764_v39 }
 0x126   :  { %v162_v58 = vpop.f32.mrb[0].mxu0 }
 0x127   :  { %v163_v59 = vadd.f32 %v162_v58, %v97_v56  ;;  %v164_v60 = vpop.f32.mrb[1].mxu0 }
 0x128   :  { %v165_v61 = vadd.f32 %v164_v60, %v101_v57  ;;  %v166_v62 = vpop.f32.mrb[2].mxu0 }
 0x129   :  { %v167_v63 = vadd.f32 %v166_v62, %v97_v56  ;;  %v168_v0 = vpop.f32.mrb[3].mxu0  ;;  %v171_v2 = vmax.f32 %v163_v59, 0.0 }
 0x12a   :  { %v169_v1 = vadd.f32 %v168_v0, %v101_v57  ;;  %v172_v4 = vmax.f32 %v165_v61, 0.0 }
 0x12b   :  { %v173_v3 = vmax.f32 %v167_v63, 0.0 }
 0x12c   :  { %v174_v5 = vmax.f32 %v169_v1, 0.0 }
 0x12d   :  { %v175_v6 = vpack.c.bf16 %v173_v3, %v171_v2 }
 0x12e   :  { %v176_v7 = vpack.c.bf16 %v174_v5, %v172_v4 }
 0x130   :  { %412 = vmatprep.mubr.bf16.mxu1 %v176_v7 }
 0x131   :  { %413 = vmatmul.mubr.bf16.vlgmr.msra.gmra.mrb[0].mxu1 %v175_v6 }
 0x204   :  { %v414_v16 = vpop.f32.mrb[0].mxu1 }
 0x205   :  { %v415_v17 = vadd.f32 %v414_v16, %v213_v14  ;;  %v416_v18 = vpop.f32.mrb[1].mxu1 }
 0x206   :  { %v417_v19 = vadd.f32 %v416_v18, %v217_v15  ;;  %v418_v20 = vpop.f32.mrb[2].mxu1 }
 0x207   :  { %v419_v21 = vadd.f32 %v418_v20, %v213_v14  ;;  %v420_v22 = vpop.f32.mrb[3].mxu1  ;;  %v423_v24 = vmax.f32 %v415_v17, 0.0 }
 0x208   :  { %v421_v23 = vadd.f32 %v420_v22, %v217_v15  ;;  %v424_v26 = vmax.f32 %v417_v19, 0.0 }
 0x209   :  { %v425_v25 = vmax.f32 %v419_v21, 0.0 }
 0x20a   :  { %v426_v27 = vmax.f32 %v421_v23, 0.0 }
 0x20b   :  { %v427_v28 = vpack.c.bf16 %v425_v25, %v423_v24 }
 0x20c   :  { %v428_v29 = vpack.c.bf16 %v426_v27, %v424_v26 }
 0x20e   :  { %595 = vmatprep.mubr.bf16.mxu0 %v428_v29 }
 0x20f   :  { %596 = vmatmul.mubr.bf16.vlgmr.msra.gmra.mrb[4].mxu0 %v427_v28 }
 0x2e2   :  { %v695_v30 = vpop.f32.mrb[4].mxu0 }
 0x2e3   :  { %v696_v32 = vpop.f32.mrb[5].mxu0 }
 0x2e4   :  { %v697_v33 = vadd.f32 %v696_v32, %v695_v30  ;;  %v698_v34 = vpop.f32.mrb[6].mxu0 }
 0x2e5   :  { %v699_v35 = vpop.f32.mrb[7].mxu0 }
 0x2e6   :  { %v598_v36 = vadd.f32 %v697_v33, %v662_v31  ;;  %v700_v37 = vadd.f32 %v699_v35, %v698_v34 }
 0x2e8   :  { %604 = vst [vmem:[#allocation10] sm:$0xff] %v598_v36  ;;  %v601_v38 = vadd.f32 %v700_v37, %v662_v31 }
 0x2ea   :  { %605 = vst [vmem:[#allocation10 + $0x8] sm:$0xff] %v601_v38 }
 0x2eb   :  { %880 = shalt.err (!%p877_p8)
}
 0x2ec   :  { %s881_s15 = scalar_lea.hbm %s1051_s7, 256 }
 0x2ed   :  { %p882_p9 = scmp.ne.s32.totalorder %s1051_s7, %s881_s15  ;;  %p885_p10 = scmp.lt.u32.totalorder %s881_s15, %s1051_s7 }
 0x2ef   :  { %p887_p11 = pnand %p885_p10, %p882_p9 }
 0x2f1   :  { %890 = shalt.err (!%p887_p11)
}
 0x2f2   :  { %617 = dma.vmem_to_hbm [thread:$0]  %s612_s10, 256, %s1051_s7, [#allocation4], %s901_s13, %s901_s13, %s902_s14  }
 0x2f3   :  { %897 = dma.done.wait [#allocation4], 256  }
 0x2f4   :  { %898 = vsyncadd [#allocation4], 4294967040 }
 0x2f5   :  { %621 = vsyncpa [#allocation3], 1 }
 0x2f6   :  { %622 = vsyncpa [#allocation6], 1 }
 0x2f7   :  { %623 = vsyncpa [#allocation9], 1 }
 0x2f8   :  { %624 = vsyncpa [#allocation4], 1 }

</bundles_post_ra>
